<compile_context>
chip_gen: v5e
topology: v5e:2x2
jax: 0.10.0
libtpu: 0.0.40
codegen_flags: <defaults>
</compile_context>

<pallas_src>
import jax
import jax.numpy as jnp
from jax.experimental import pallas as pl
from jax.experimental.pallas import tpu as pltpu


# ----------------------------------------------------------------------------
# Pallas kernel: copy the two row-blocks side by side into the output block.
# Both stores are static slices of the output Ref (full-row, lane-dense copies
# whenever k1 is a multiple of 128 — true for typical conv activations).
# ----------------------------------------------------------------------------
def _concat_kernel(x1_ref, x2_ref, o_ref):
    k1 = x1_ref.shape[-1]
    o_ref[:, :k1] = x1_ref[...]
    o_ref[:, k1:] = x2_ref[...]
    # TODO(synk): if k1 % 128 != 0 the second store degrades to masked,
    # cross-lane stores (correct but slower); pad k1 or tile channels to fix.


def _round_up(x, m):
    return ((x + m - 1) // m) * m


def _vmem_capacity_bytes():
    """Physical VMEM of the attached TPU; conservative v7x value on failure."""
    try:
        return int(pltpu.get_tpu_info().vmem_capacity_bytes)
    except Exception:
        return 64 * 1024 * 1024  # v7x minimum -> safe everywhere


# ----------------------------------------------------------------------------
# Wrapper: torch.cat([X_1, X_2], dim=1) for tensors of rank >= 2.
# ----------------------------------------------------------------------------
def concat_dim1_pallas(x1, x2):
    assert x1.dtype == x2.dtype, "inputs must share a dtype (as torch.cat requires)"
    assert x1.shape[0] == x2.shape[0], "leading (batch) dims must match"
    assert x1.shape[2:] == x2.shape[2:], "trailing dims must match for cat(dim=1)"

    N = x1.shape[0]
    c1, c2 = x1.shape[1], x2.shape[1]
    rest = x1.shape[2:]
    inner = 1
    for d in rest:
        inner *= d
    k1, k2 = c1 * inner, c2 * inner
    kout = k1 + k2
    itemsize = jnp.dtype(x1.dtype).itemsize

    # Flatten to lane-dense 2-D slabs; cat(dim=1) == row-wise concat of these.
    x1f = x1.reshape(N, k1)
    x2f = x2.reshape(N, k2)

    # ---- Generation-aware budgets -------------------------------------------
    vmem_cap = _vmem_capacity_bytes()
    safe_cap = int(vmem_cap * 0.7)                # ~45 MiB v7x, ~90 MiB v5e/v6e
    budget = min(16 * 1024 * 1024, safe_cap // 3)  # combined (in+out) block bytes

    # Dtype-aware sublane tile: 8 rows for 32-bit, 16 for bf16, 32 for int8/fp8.
    packing = max(1, 4 // itemsize)
    min_tb = 8 * packing

    bytes_per_row = (k1 + k2 + kout) * itemsize
    tb = max(1, budget // max(1, bytes_per_row))

    if N <= min_tb:
        # Tiny batch: full-batch block (block dim == full array dim is legal).
        tb = N
    else:
        tb = max(min_tb, (min(tb, N) // min_tb) * min_tb)
        # Guarantee >=2 grid steps so both v7x TensorCores get work via the
        # "parallel" axis (adds one ~0.35us step on 1-TC parts: negligible).
        two_step_tb = _round_up(pl.cdiv(N, 2), min_tb)
        tb = min(tb, two_step_tb)

    grid = (pl.cdiv(N, tb),)

    # Scoped-VMEM limit: double-buffered in+out blocks plus headroom, clamped
    # to the per-generation safe cap.
    block_bytes = tb * bytes_per_row
    vmem_limit = 2 * block_bytes + (4 * 1024 * 1024)
    if vmem_limit > safe_cap:
        # TODO(synk): for pathologically wide rows (min_tb rows already exceed
        # the scoped-VMEM cap) add a 128-aligned column-tiled two-pass path
        # instead of relying on a large scoped-VMEM limit.
        vmem_limit = safe_cap
    vmem_limit = max(vmem_limit, 16 * 1024 * 1024)

    cost = pl.CostEstimate(
        flops=0,
        transcendentals=0,
        bytes_accessed=2 * N * kout * itemsize,  # read everything + write everything
    )

    out_flat = pl.pallas_call(
        _concat_kernel,
        out_shape=jax.ShapeDtypeStruct((N, kout), x1.dtype),
        grid_spec=pltpu.PrefetchScalarGridSpec(
            num_scalar_prefetch=0,
            grid=grid,
            in_specs=[
                pl.BlockSpec((tb, k1), lambda i: (i, 0)),
                pl.BlockSpec((tb, k2), lambda i: (i, 0)),
            ],
            out_specs=pl.BlockSpec((tb, kout), lambda i: (i, 0)),
        ),
        compiler_params=pltpu.CompilerParams(
            dimension_semantics=("parallel",),   # rows independent -> megacore split
            vmem_limit_bytes=int(vmem_limit),
        ),
        cost_estimate=cost,
    )(x1f, x2f)

    return out_flat.reshape((N, c1 + c2) + rest)


# ----------------------------------------------------------------------------
# Module-equivalent forward.
# ----------------------------------------------------------------------------
def concat_forward(x1, x2):
    """Equivalent of Concat.forward: torch.cat([x1, x2], dim=1)."""
    return concat_dim1_pallas(x1, x2)


if __name__ == "__main__":
    key = jax.random.PRNGKey(0)
    ka, kb = jax.random.split(key)

    # Small shapes consistent with the module: (batch=2, channels=4, 16, 16).
    x1 = jax.random.normal(ka, (2, 4, 16, 16), dtype=jnp.float32)
    x2 = jax.random.normal(kb, (2, 4, 16, 16), dtype=jnp.float32)

    out = concat_forward(x1, x2)
    out = jax.block_until_ready(out)

    # Pure-JAX reference.
    ref = jnp.concatenate([x1, x2], axis=1)
    assert out.shape == ref.shape, f"shape mismatch: {out.shape} vs {ref.shape}"
    assert jnp.array_equal(out, ref), "mismatch vs jnp.concatenate reference"

    print("KERNEL_OK")
</pallas_src>

<mosaic_0001>
module attributes {stable_mosaic.version = 11 : i64} {
  func.func @_concat_kernel(%arg0: i32, %arg1: memref<2x1024xf32, #tpu.memory_space<vmem>>, %arg2: memref<2x1024xf32, #tpu.memory_space<vmem>>, %arg3: memref<2x2048xf32, #tpu.memory_space<vmem>>) attributes {dimension_semantics = [#tpu.dimension_semantics<parallel>], iteration_bounds = array<i64: 1>, scalar_prefetch = 0 : i64, scratch_operands = 0 : i64, tpu.core_type = #tpu.core_type<tc>, window_params = [{transform_indices = @transform_0, window_bounds = array<i64: 2, 1024>}, {transform_indices = @transform_1, window_bounds = array<i64: 2, 1024>}, {transform_indices = @transform_2, window_bounds = array<i64: 2, 2048>}]} {
    %c0 = arith.constant 0 : index
    %c0_0 = arith.constant 0 : index
    %0 = vector.load %arg1[%c0, %c0_0] : memref<2x1024xf32, #tpu.memory_space<vmem>>, vector<2x1024xf32>
    %c0_1 = arith.constant 0 : index
    %c0_2 = arith.constant 0 : index
    %1 = vector.load %arg3[%c0_1, %c0_2] : memref<2x2048xf32, #tpu.memory_space<vmem>>, vector<2x1024xf32>
    tpu.vector_store %arg3[%c0_1, %c0_2], %0 {strides = array<i32>} : memref<2x2048xf32, #tpu.memory_space<vmem>>, vector<2x1024xf32>,
    %c0_3 = arith.constant 0 : index
    %c0_4 = arith.constant 0 : index
    %2 = vector.load %arg2[%c0_3, %c0_4] : memref<2x1024xf32, #tpu.memory_space<vmem>>, vector<2x1024xf32>
    %c0_5 = arith.constant 0 : index
    %c1024 = arith.constant 1024 : index
    %3 = vector.load %arg3[%c0_5, %c1024] : memref<2x2048xf32, #tpu.memory_space<vmem>>, vector<2x1024xf32>
    tpu.vector_store %arg3[%c0_5, %c1024], %2 {strides = array<i32>} : memref<2x2048xf32, #tpu.memory_space<vmem>>, vector<2x1024xf32>,
    return
  }
  func.func @transform_0(%arg0: i32) -> (i32, i32) {
    %c0_i32 = arith.constant 0 : i32
    %c0_i32_0 = arith.constant 0 : i32
    return %arg0, %c0_i32 : i32, i32
  }
  func.func @transform_1(%arg0: i32) -> (i32, i32) {
    %c0_i32 = arith.constant 0 : i32
    %c0_i32_0 = arith.constant 0 : i32
    return %arg0, %c0_i32 : i32, i32
  }
  func.func @transform_2(%arg0: i32) -> (i32, i32) {
    %c0_i32 = arith.constant 0 : i32
    %c0_i32_0 = arith.constant 0 : i32
    return %arg0, %c0_i32 : i32, i32
  }
}

</mosaic_0001>

<bundles_post_ra>
// kernel: tpu_custom_call.1
= control target key start
LH: loop header
LB: loop body
LE: loop exit
PB: predicated region body
PF: predicated region fallthrough
CT: control target
= control target key end

     0   :  { %7 = vsyncpa [#allocation3], 0  ;;  %s174_s0 = inlined_call_operand.hbm [shape: f32[2,1024], index: 0, kind: input, shape index: {}]   ;;  %s175_s1 = inlined_call_operand.hbm [shape: f32[2,1024], index: 1, kind: input, shape index: {}]   ;;  %s176_s2 = inlined_call_operand.hbm [shape: f32[2,2048], index: 2, kind: output, shape index: {}]  }
   0x1   :  { %8 = vsyncpa [#allocation6], 0 }
   0x2   :  { %9 = vsyncpa [#allocation4], 0  ;;  %s15_s11 = sshll.u32 %s174_s0, 4  ;;  %s147_s12 = smov [#allocation2]   ;;  %s16_s11 = int_to_ptr.hbm [resolvable:$true] %s15_s11 }
   0x3   :  { %s17_s13 = sshll.u32 %s147_s12, 4  ;;  %s26_s16 = sshll.u32 %s175_s1, 4  ;;  %s18_s13 = int_to_ptr.vmem [resolvable:$true] %s17_s13  ;;  %s27_s16 = int_to_ptr.hbm [resolvable:$true] %s26_s16 }
   0x4   :  { %20 = dma.hbm_to_vmem [thread:$0]  %s16_s11, 256, %s18_s13, [#allocation3]  }
   0x5   :  { %s148_s17 = smov [#allocation5]  }
   0x6   :  { %s28_s18 = sshll.u32 %s148_s17, 4  ;;  %s29_s18 = int_to_ptr.vmem [resolvable:$true] %s28_s18 }
   0x7   :  { %31 = dma.hbm_to_vmem [thread:$0]  %s27_s16, 256, %s29_s18, [#allocation6]  }
   0x8   :  { %141 = dma.done.wait [#allocation3], 256  }
   0x9   :  { %142 = vsyncadd [#allocation3], 4294967040 }
   0xa   :  { %143 = dma.done.wait [#allocation6], 256  }
   0xb   :  { %144 = vsyncadd [#allocation6], 4294967040  ;;  %s149_s19 = smov [#allocation7]   ;;  %s55_s22 = sshll.u32 %s176_s2, 4  ;;  %v40_v0 = vld [vmem:[#allocation2] sm:$0xff]  ;;  %v41_v1 = vld [vmem:[#allocation2 + $0x8] sm:$0xff]  ;;  %s56_s22 = int_to_ptr.hbm [resolvable:$true] %s55_s22 }
   0xc   :  { %s53_s0 = sshll.u32 %s149_s19, 4  ;;  %v44_v2 = vld [vmem:[#allocation5] sm:$0xff]  ;;  %42 = vst [vmem:[#allocation7] sm:$0xff] %v40_v0  ;;  %v45_v3 = vld [vmem:[#allocation5 + $0x8] sm:$0xff]  ;;  %s54_s0 = int_to_ptr.vmem [resolvable:$true] %s53_s0 }
   0xd   :  { %43 = vst [vmem:[#allocation7 + $0x8] sm:$0xff] %v41_v1 }
   0xe   :  { %46 = vst [vmem:[#allocation7 + $0x10] sm:$0xff] %v44_v2 }
   0xf   :  { %47 = vst [vmem:[#allocation7 + $0x18] sm:$0xff] %v45_v3 }
  0x10   :  { %58 = dma.vmem_to_hbm [thread:$0]  %s54_s0, 512, %s56_s22, [#allocation4]  }
  0x11   :  { %145 = dma.done.wait [#allocation4], 512  }
  0x12   :  { %146 = vsyncadd [#allocation4], 4294966784 }
  0x13   :  { %63 = vsyncpa [#allocation3], 1 }
  0x14   :  { %64 = vsyncpa [#allocation6], 1 }
  0x15   :  { %65 = vsyncpa [#allocation4], 1 }

</bundles_post_ra>
